<compile_context>
chip_gen: v6e
topology: v6e:2x2x1
jax: 0.10.0
libtpu: 0.0.40
codegen_flags: <defaults>
</compile_context>

<pallas_src>
import functools

import jax
import jax.numpy as jnp
from jax import lax
from jax.experimental import pallas as pl
from jax.experimental.pallas import tpu as pltpu

_EPS = 1e-5  # nn.GroupNorm default


def _round_up(x, m):
    return (x + m - 1) // m * m


def _vmem_capacity_bytes():
    try:
        return int(pltpu.get_tpu_info().vmem_capacity_bytes)
    except Exception:
        return 64 << 20  # conservative fallback (v7x per-TC physical)


# --------------------------------------------------------------------------
# Fast path: one or more whole samples per grid step.
# --------------------------------------------------------------------------
def _gn_block_kernel(x_ref, gb_ref, o_ref, *, inv_n):
    # x_ref: (B, C, HW) block (lane-dense on HW); gb_ref: (C, 2) [gamma, beta].
    x = x_ref[...].astype(jnp.float32)                       # (B, C, HW)
    # Fused single streaming pass: sum and sum-of-squares together in f32.
    # (E[x^2] - mean^2 in f32 is safe at activation scales; clamp var >= 0.)
    s1 = jnp.sum(jnp.sum(x, axis=2, keepdims=True), axis=1, keepdims=True)
    s2 = jnp.sum(jnp.sum(x * x, axis=2, keepdims=True), axis=1, keepdims=True)
    mean = s1 * inv_n                                        # (B, 1, 1)
    var = jnp.maximum(s2 * inv_n - mean * mean, 0.0)
    inv = lax.rsqrt(var + _EPS)
    gamma = gb_ref[:, 0:1][None]                             # (1, C, 1)
    beta = gb_ref[:, 1:2][None]
    scale = inv * gamma                                      # (B, C, 1)
    shift = beta - mean * scale
    # Single per-element FMA, per-channel broadcast across lanes.
    o_ref[...] = (x * scale + shift).astype(o_ref.dtype)


# --------------------------------------------------------------------------
# Tiled path (large samples): stats kernel + normalize kernel.
# --------------------------------------------------------------------------
def _gn_stats_kernel(x_ref, p_ref, *, hw, tile_hw):
    # x_ref: (1, C, tile_hw); p_ref: (1, 1, 1, 2) per-tile [sum, sumsq] (f32).
    s = pl.program_id(1)
    x = x_ref[0].astype(jnp.float32)                         # (C, T)
    # Mask lanes beyond the valid hw extent (final partial tile).
    col = lax.broadcasted_iota(jnp.int32, x.shape, 1) + s * tile_hw
    xm = jnp.where(col < hw, x, 0.0)
    s1 = jnp.sum(jnp.sum(xm, axis=1, keepdims=True), axis=0, keepdims=True)
    s2 = jnp.sum(jnp.sum(xm * xm, axis=1, keepdims=True), axis=0, keepdims=True)
    p_ref[...] = jnp.concatenate([s1, s2], axis=1).reshape(1, 1, 1, 2)


def _gn_apply_kernel(x_ref, ss_ref, o_ref):
    # x_ref: (1, C, tile_hw); ss_ref: (1, C, 2) per-sample [scale, shift] (f32).
    x = x_ref[0].astype(jnp.float32)                         # (C, T)
    scale = ss_ref[0, :, 0:1]                                # (C, 1)
    shift = ss_ref[0, :, 1:2]
    o_ref[0] = (x * scale + shift).astype(o_ref.dtype)


# --------------------------------------------------------------------------
# Wrapper.
# --------------------------------------------------------------------------
def groupnorm1(x, gb, *, force_tiled=False, tile_hw=None):
    """GroupNorm(num_groups=1, num_channels=C) over NCHW input x.

    gb: (C, 2) f32 packed [gamma, beta] (channel on sublanes).
    """
    N, C, H, W = x.shape
    hw = H * W
    x3 = x.reshape(N, C, hw)  # free reshape for contiguous NCHW; lane-dense on HW
    itemsize = x.dtype.itemsize
    pack = 8 * (4 // itemsize)            # sublane packing: f32->8, bf16->16, i8->32
    c_pad = _round_up(C, pack)
    hw_pad = _round_up(hw, 128)

    vmem_cap = _vmem_capacity_bytes()
    # ~15% headroom below physical capacity (v7x: ~54/64 MiB; v5e/v6e: ~108/128 MiB).
    vmem_limit = int(min(max(int(0.85 * vmem_cap), 32 << 20), vmem_cap))
    budget = vmem_limit - (2 << 20)       # headroom for gb tile, sems, Mosaic scratch

    # Padded VMEM footprint of one sample on the fast path:
    # in+out blocks double-buffered + two f32 temporaries (x, x*x).
    in_block = c_pad * hw_pad * itemsize
    per_sample = 2 * (in_block + in_block) + 2 * (c_pad * hw_pad * 4)
    max_b = budget // per_sample

    if max_b >= 1 and not force_tiled:
        # ---------------- fast path ----------------
        # Multi-sample blocks amortize per-step overhead, but keep >= 2 grid
        # steps when N >= 2 so both v7x TensorCores get work.
        max_b_par = max(1, N // 2) if N >= 2 else 1
        b_tile = 1
        for cand in range(int(min(N, max_b, max_b_par)), 0, -1):
            if N % cand == 0:
                b_tile = cand
                break
        kernel = functools.partial(_gn_block_kernel, inv_n=1.0 / (C * hw))
        y3 = pl.pallas_call(
            kernel,
            out_shape=jax.ShapeDtypeStruct((N, C, hw), x.dtype),
            grid_spec=pltpu.PrefetchScalarGridSpec(
                num_scalar_prefetch=0,
                grid=(N // b_tile,),
                in_specs=[
                    pl.BlockSpec((b_tile, C, hw), lambda n: (n, 0, 0)),
                    pl.BlockSpec((C, 2), lambda n: (0, 0)),
                ],
                out_specs=pl.BlockSpec((b_tile, C, hw), lambda n: (n, 0, 0)),
            ),
            compiler_params=pltpu.CompilerParams(
                dimension_semantics=("parallel",),
                vmem_limit_bytes=vmem_limit,
            ),
        )(x3, gb)
        return y3.reshape(N, C, H, W)

    # ---------------- tiled (N, S) path ----------------
    if tile_hw is None:
        # bytes per lane column: in+out double-buffered + one f32 temp
        per_lane = c_pad * (2 * itemsize) * 2 + c_pad * 4
        tile_hw = (max(128, budget // per_lane) // 128) * 128
    tile_hw = int(max(128, min(_round_up(tile_hw, 128), hw_pad)))
    n_s = pl.cdiv(hw, tile_hw)

    # Pass 1: per-(sample, tile) partial sum / sum-of-squares.
    stats_kernel = functools.partial(_gn_stats_kernel, hw=hw, tile_hw=tile_hw)
    partials = pl.pallas_call(
        stats_kernel,
        out_shape=jax.ShapeDtypeStruct((N, n_s, 1, 2), jnp.float32),
        grid_spec=pltpu.PrefetchScalarGridSpec(
            num_scalar_prefetch=0,
            grid=(N, n_s),
            in_specs=[pl.BlockSpec((1, C, tile_hw), lambda n, s: (n, 0, s))],
            out_specs=pl.BlockSpec((1, 1, 1, 2), lambda n, s: (n, s, 0, 0)),
        ),
        compiler_params=pltpu.CompilerParams(
            dimension_semantics=("parallel", "parallel"),
            vmem_limit_bytes=vmem_limit,
        ),
    )(x3)

    # Tiny per-sample fold (N * n_s * 2 f32 elements) in plain JAX.
    s1 = jnp.sum(partials[..., 0, 0], axis=1)                # (N,)
    s2 = jnp.sum(partials[..., 0, 1], axis=1)                # (N,)
    inv_n = 1.0 / (C * hw)
    mean = s1 * inv_n
    var = jnp.maximum(s2 * inv_n - mean * mean, 0.0)
    inv = lax.rsqrt(var + _EPS)
    scale = inv[:, None] * gb[None, :, 0]                    # (N, C)
    shift = gb[None, :, 1] - mean[:, None] * scale           # (N, C)
    ss = jnp.stack([scale, shift], axis=-1)                  # (N, C, 2)

    # Pass 2: folded per-element FMA, fully parallel over (N, S).
    y3 = pl.pallas_call(
        _gn_apply_kernel,
        out_shape=jax.ShapeDtypeStruct((N, C, hw), x.dtype),
        grid_spec=pltpu.PrefetchScalarGridSpec(
            num_scalar_prefetch=0,
            grid=(N, n_s),
            in_specs=[
                pl.BlockSpec((1, C, tile_hw), lambda n, s: (n, 0, s)),
                pl.BlockSpec((1, C, 2), lambda n, s: (n, 0, 0)),
            ],
            out_specs=pl.BlockSpec((1, C, tile_hw), lambda n, s: (n, 0, s)),
        ),
        compiler_params=pltpu.CompilerParams(
            dimension_semantics=("parallel", "parallel"),
            vmem_limit_bytes=vmem_limit,
        ),
    )(x3, ss)
    return y3.reshape(N, C, H, W)
    # TODO(synk): when H*W < 128 (masked vst.msk stores), choose an alternative
    # lane-dense layout (fold channels/batch into the lane axis with expanded
    # per-element scale/shift) instead of the (C, hw) layout.


class PreNorm:
    """PreNorm(dim, fn): y = fn(GroupNorm(1, dim)(x)). fn is any JAX callable."""

    def __init__(self, dim, fn):
        self.fn = fn
        self.dim = dim
        # nn.GroupNorm init: weight = ones, bias = zeros (deterministic).
        gamma = jnp.ones((dim,), jnp.float32)
        beta = jnp.zeros((dim,), jnp.float32)
        # Packed once; (C, 2) keeps channels on sublanes (no in-kernel transpose).
        self.gb = jnp.stack([gamma, beta], axis=-1)

    def __call__(self, x):
        x = groupnorm1(x, self.gb)
        # TODO(synk): fuse `fn` into the normalize epilogue when it is
        # elementwise (or fold scale/shift into fn's input pipeline) to avoid
        # an extra HBM round-trip of the activation.
        return self.fn(x)


if __name__ == "__main__":
    key = jax.random.PRNGKey(0)
    N, C, H, W = 2, 4, 16, 16
    x = jax.random.normal(key, (N, C, H, W), dtype=jnp.float32)

    def ref_gn(x, gamma, beta):
        mean = jnp.mean(x, axis=(1, 2, 3), keepdims=True)
        var = jnp.mean((x - mean) ** 2, axis=(1, 2, 3), keepdims=True)
        y = (x - mean) / jnp.sqrt(var + _EPS)
        return y * gamma.reshape(1, -1, 1, 1) + beta.reshape(1, -1, 1, 1)

    # fn is an arbitrary wrapped module in the PyTorch code; identity here.
    model = PreNorm(C, fn=lambda t: t)
    out = jax.block_until_ready(model(x))
    ref = ref_gn(x, model.gb[:, 0], model.gb[:, 1])
    assert jnp.allclose(out, ref, atol=1e-4, rtol=1e-4), "fast-path mismatch"

    # Exercise the multi-sample fast path (B_TILE > 1).
    x_ms = jax.random.normal(jax.random.PRNGKey(0), (4, 4, 8, 16), jnp.float32)
    out_ms = jax.block_until_ready(groupnorm1(x_ms, model.gb))
    ref_ms = ref_gn(x_ms, model.gb[:, 0], model.gb[:, 1])
    assert jnp.allclose(out_ms, ref_ms, atol=1e-4, rtol=1e-4), "multi-sample mismatch"

    # Exercise the tiled (N, S) path, incl. masked partial final tile (hw=200).
    x_t = jax.random.normal(jax.random.PRNGKey(0), (2, 4, 10, 20), jnp.float32)
    out_t = jax.block_until_ready(
        groupnorm1(x_t, model.gb, force_tiled=True, tile_hw=128))
    ref_t = ref_gn(x_t, model.gb[:, 0], model.gb[:, 1])
    assert jnp.allclose(out_t, ref_t, atol=1e-4, rtol=1e-4), "tiled-path mismatch"

    print("KERNEL_OK")
</pallas_src>

<mosaic_0001>
module attributes {stable_mosaic.version = 11 : i64} {
  func.func @_gn_block_kernel(%arg0: i32, %arg1: memref<1x4x256xf32, #tpu.memory_space<vmem>>, %arg2: memref<4x2xf32, #tpu.memory_space<vmem>>, %arg3: memref<1x4x256xf32, #tpu.memory_space<vmem>>) attributes {dimension_semantics = [#tpu.dimension_semantics<parallel>], iteration_bounds = array<i64: 2>, scalar_prefetch = 0 : i64, scratch_operands = 0 : i64, tpu.core_type = #tpu.core_type<tc>, window_params = [{transform_indices = @transform_0, window_bounds = array<i64: 1, 4, 256>}, {pipeline_mode = #tpu.pipeline_mode<synchronous>, transform_indices = @transform_1, window_bounds = array<i64: 4, 2>}, {transform_indices = @transform_2, window_bounds = array<i64: 1, 4, 256>}]} {
    %c0 = arith.constant 0 : index
    %c0_0 = arith.constant 0 : index
    %c0_1 = arith.constant 0 : index
    %0 = vector.load %arg1[%c0, %c0_0, %c0_1] : memref<1x4x256xf32, #tpu.memory_space<vmem>>, vector<1x4x256xf32>
    %cst = arith.constant dense<0.000000e+00> : vector<1x4xf32>
    %1 = vector.multi_reduction <add>, %0, %cst [2] : vector<1x4x256xf32> to vector<1x4xf32>
    %2 = vector.shape_cast %1 : vector<1x4xf32> to vector<1x4x1xf32>
    %cst_2 = arith.constant dense<0.000000e+00> : vector<1x1xf32>
    %3 = vector.multi_reduction <add>, %2, %cst_2 [1] : vector<1x4x1xf32> to vector<1x1xf32>
    %4 = vector.shape_cast %3 : vector<1x1xf32> to vector<1x1x1xf32>
    %5 = arith.mulf %0, %0 : vector<1x4x256xf32>
    %cst_3 = arith.constant dense<0.000000e+00> : vector<1x4xf32>
    %6 = vector.multi_reduction <add>, %5, %cst_3 [2] : vector<1x4x256xf32> to vector<1x4xf32>
    %7 = vector.shape_cast %6 : vector<1x4xf32> to vector<1x4x1xf32>
    %cst_4 = arith.constant dense<0.000000e+00> : vector<1x1xf32>
    %8 = vector.multi_reduction <add>, %7, %cst_4 [1] : vector<1x4x1xf32> to vector<1x1xf32>
    %9 = vector.shape_cast %8 : vector<1x1xf32> to vector<1x1x1xf32>
    %cst_5 = arith.constant 9.765625E-4 : f32
    %10 = vector.broadcast %cst_5 : f32 to vector<1x1x1xf32>
    %11 = arith.mulf %4, %10 : vector<1x1x1xf32>
    %cst_6 = arith.constant 9.765625E-4 : f32
    %12 = vector.broadcast %cst_6 : f32 to vector<1x1x1xf32>
    %13 = arith.mulf %9, %12 : vector<1x1x1xf32>
    %14 = arith.mulf %11, %11 : vector<1x1x1xf32>
    %15 = arith.subf %13, %14 : vector<1x1x1xf32>
    %cst_7 = arith.constant 0.000000e+00 : f32
    %16 = vector.broadcast %cst_7 : f32 to vector<1x1x1xf32>
    %17 = arith.maximumf %15, %16 : vector<1x1x1xf32>
    %cst_8 = arith.constant 9.99999974E-6 : f32
    %18 = vector.broadcast %cst_8 : f32 to vector<1x1x1xf32>
    %19 = arith.addf %17, %18 : vector<1x1x1xf32>
    %20 = math.rsqrt %19 : vector<1x1x1xf32>
    %c0_9 = arith.constant 0 : index
    %c0_10 = arith.constant 0 : index
    %21 = vector.load %arg2[%c0_9, %c0_10] : memref<4x2xf32, #tpu.memory_space<vmem>>, vector<4x1xf32>
    %22 = vector.shape_cast %21 : vector<4x1xf32> to vector<1x4x1xf32>
    %c0_11 = arith.constant 0 : index
    %c1 = arith.constant 1 : index
    %23 = vector.load %arg2[%c0_11, %c1] : memref<4x2xf32, #tpu.memory_space<vmem>>, vector<4x1xf32>
    %24 = vector.shape_cast %23 : vector<4x1xf32> to vector<1x4x1xf32>
    %25 = vector.broadcast %20 : vector<1x1x1xf32> to vector<1x4x1xf32>
    %26 = arith.mulf %25, %22 : vector<1x4x1xf32>
    %27 = vector.broadcast %11 : vector<1x1x1xf32> to vector<1x4x1xf32>
    %28 = arith.mulf %27, %26 : vector<1x4x1xf32>
    %29 = arith.subf %24, %28 : vector<1x4x1xf32>
    %30 = vector.broadcast %26 : vector<1x4x1xf32> to vector<1x4x256xf32>
    %31 = arith.mulf %0, %30 : vector<1x4x256xf32>
    %32 = vector.broadcast %29 : vector<1x4x1xf32> to vector<1x4x256xf32>
    %33 = arith.addf %31, %32 : vector<1x4x256xf32>
    %c0_12 = arith.constant 0 : index
    %c0_13 = arith.constant 0 : index
    %c0_14 = arith.constant 0 : index
    %34 = vector.load %arg3[%c0_12, %c0_13, %c0_14] : memref<1x4x256xf32, #tpu.memory_space<vmem>>, vector<1x4x256xf32>
    tpu.vector_store %arg3[%c0_12, %c0_13, %c0_14], %33 {strides = array<i32>} : memref<1x4x256xf32, #tpu.memory_space<vmem>>, vector<1x4x256xf32>,
    return
  }
  func.func @transform_0(%arg0: i32) -> (i32, i32, i32) {
    %c0_i32 = arith.constant 0 : i32
    %c0_i32_0 = arith.constant 0 : i32
    %c0_i32_1 = arith.constant 0 : i32
    return %arg0, %c0_i32, %c0_i32_0 : i32, i32, i32
  }
  func.func @transform_1(%arg0: i32) -> (i32, i32) {
    %c0_i32 = arith.constant 0 : i32
    %c0_i32_0 = arith.constant 0 : i32
    %c0_i32_1 = arith.constant 0 : i32
    return %c0_i32, %c0_i32_0 : i32, i32
  }
  func.func @transform_2(%arg0: i32) -> (i32, i32, i32) {
    %c0_i32 = arith.constant 0 : i32
    %c0_i32_0 = arith.constant 0 : i32
    %c0_i32_1 = arith.constant 0 : i32
    return %arg0, %c0_i32, %c0_i32_0 : i32, i32, i32
  }
}

</mosaic_0001>

<bundles_post_ra>
// kernel: tpu_custom_call.1
= control target key start
LH: loop header
LB: loop body
LE: loop exit
PB: predicated region body
PF: predicated region fallthrough
CT: control target
= control target key end

     0   :  { %7 = vsyncpa [#allocation3], 0  ;;  %s660_s0 = inlined_call_operand.hbm [shape: f32[2,4,256], index: 0, kind: input, shape index: {}]   ;;  %s661_s1 = inlined_call_operand.vmem [shape: f32[4,2], index: 1, kind: input, shape index: {}]   ;;  %s662_s2 = inlined_call_operand.hbm [shape: f32[2,4,256], index: 2, kind: output, shape index: {}]  }
   0x1   :  { %9 = vsyncpa [#allocation3 + $0x1], 0 }
   0x2   :  { %10 = vsyncpa [#allocation4], 0 }
   0x3   :  { %12 = vsyncpa [#allocation4 + $0x1], 0  ;;  %s506_s9 = smov 0   ;;  %s508_s10 = smov 0  }
   0x4   :  { %s510_s11 = smov 0   ;;  %s512_s12 = smov 0  }
   0x5 LB: > { %s527_s13 = sadd.s32 4294967295, %s483_s12   ;;  %s320_s14 = sadd.s32 4294967294, %s483_s12   ;;  %s483_s12 = sphi %s512_s12, %s679_s12   ;;  %s479_s11 = sphi %s510_s11, %s678_s11   ;;  %s475_s10 = sphi %s508_s10, %s677_s10   ;;  %s471_s9 = sphi %s506_s9, %s676_s9  }
   0x6   : > { %s531_s15 = sadd.s32 1, %s483_s12   ;;  %s25_s16 = sadd.s32 1, %s479_s11 }
   0x7   : > { %s22_s17 = ssub.s32 %s483_s12, %s531_s15  ;;  %p32_p0 = scmp.ne.s32.totalorder %s479_s11, %s475_s10 }
   0x8   : > { %p23_p1 = scmp.eq.s32.totalorder %s22_s17, 0  ;;  %p33_p2 = scmp.eq.s32.totalorder %s483_s12, 0 }
   0x9   : > { %p38_p3 = scmp.ne.s32.totalorder %s475_s10, %s471_s9  ;;  %p39_p4 = scmp.eq.s32.totalorder %s527_s13, 0 }
   0xa   : > { %s543_s18 = scalar_select %p23_p1, %s479_s11, %s25_s16  }
   0xb   : > { %p545_p5 = por %p33_p2, %p32_p0  ;;  %p549_p6 = por %p39_p4, %p38_p3 }
   0xc   : > { %p83_p7 = scmp.eq.s32.totalorder %s527_s13, 1  ;;  %p89_p8 = scmp.eq.s32.totalorder %s320_s14, 1 }
   0xd   : > { %s666_s20 = scalar_select %p549_p6, 1, 0 }
   0xe   : > { %p348_p10 = scmp.lt.s32.totalorder %s483_s12, 2  ;;  %p556_p11 = por %p83_p7, %p32_p0 }
   0xf   : > { %p560_p12 = por %p89_p8, %p38_p3  ;;  %s112_s23 = sand.u32 1, %s479_s11  }
  0x10   : > { %s667_s21 = scalar_select %p556_p11, 1, 0 }
  0x11   : > { %s668_s22 = scalar_select %p560_p12, 1, 0 }
  0x12   : > { %s334_s24 = sshll.u32 %s483_s12, 7  ;;  %s323_s25 = sshll.u32 %s112_s23, 3 }
  0x13   : > { %s569_s28 = scalar_lea.hbm %s660_s0, %s334_s24  ;;  %s116_s29 = scalar_lea.vmem [#allocation2], %s323_s25 }
  0x14   : > { %s124_s30 = sshll.u32 %s116_s29, 4  ;;  %p573_p13 = pnand %p348_p10, %p545_p5  ;;  %s577_s30 = int_to_ptr.vmem [resolvable:$true] %s124_s30 }
  0x15   : > { %s113_s4 = scalar_lea.sflag [#allocation3], %s112_s23  ;;  %s391_s5 = scalar_lea.hbm %s569_s28, 128 }
  0x16   : > { %p392_p2 = scmp.ne.s32.totalorder %s569_s28, %s391_s5  ;;  %p393_p3 = pneg %p573_p13 }
  0x17   : > { %s396_s8 = scalar_lea.hbm %s660_s0, 256  ;;  %p397_p5 = scmp.lt.s32.totalorder %s569_s28, %s660_s0 }
  0x18   : > { %p394_p4 = pnand %p393_p3, %p392_p2  ;;  %p398_p8 = scmp.lt.s32.totalorder %s396_s8, %s391_s5 }
  0x1a   : > { %p395_p7 = pneg %p394_p4  ;;  %p399_p10 = por %p398_p8, %p397_p5 }
  0x1c   : > { %p400_p9 = pnand %p399_p10, %p395_p7 }
  0x1e   : > { %403 = shalt.err (!%p400_p9)
}
  0x1f   : > { %s404_s17 = scalar_lea.vmem %s577_s30, 128  ;;  %s485_s19 = smov [#allocation2]  }
  0x20   : > { %p405_p0 = scmp.ne.s32.totalorder %s577_s30, %s404_s17  ;;  %s409_s23 = sshll.u32 %s485_s19, 4  ;;  %s410_s23 = int_to_ptr.vmem [resolvable:$false] %s409_s23 }
  0x21   : > { %s411_s24 = scalar_lea.vmem %s410_s23, 256  ;;  %p412_p4 = scmp.lt.s32.totalorder %s577_s30, %s410_s23 }
  0x22   : > { %p407_p1 = pnand %p405_p0, %p393_p3  ;;  %p413_p12 = scmp.lt.s32.totalorder %s411_s24, %s404_s17 }
  0x24   : > { %p408_p2 = pneg %p407_p1  ;;  %p414_p11 = por %p413_p12, %p412_p4 }
  0x26   : > { %p415_p6 = pnand %p414_p11, %p408_p2 }
  0x28   : > { %418 = shalt.err (!%p415_p6)
}
  0x29   : > { %343 = dma.hbm_to_vmem [thread:$0]  (!%p573_p13), %s569_s28, 128, %s577_s30, %s113_s4  }
  0x2a   : > { %p670_p9 = scmp.lt.s32.totalorder %s483_s12, 3  ;;  %p671_p7 = scmp.ge.s32.totalorder %s483_s12, 1 }
  0x2c   : > { %p130_p0 = pnand %p671_p7, %p670_p9 }
  0x2d   : > { %s604_s25 = sand.u32 (!%p130_p0), 1, %s475_s10   ;;  %p672_p6 = scmp.ne.s32.totalorder (!%p130_p0), %s666_s20, 0 }
  0x2e   : > { %133 = sbr.rel (%p130_p0) target bundleno = 497 (0x1f1), region = 28  ;;  %s327_s26 = sshll.u32 (!%p130_p0), %s604_s25, 3 }
  0x2f   : > { %s136_s27 = scalar_lea.sflag (!%p130_p0), [#allocation3], %s604_s25  ;;  %s139_s29 = scalar_lea.vmem (!%p130_p0), [#allocation2], %s327_s26 }
  0x33   : > { %462 = dma.done.wait (%p672_p6), %s136_s27, 128  }
  0x34   : > { %464 = vsyncadd (%p672_p6), %s136_s27, 4294967168  ;;  %vm164_vm0 = vcmask 1043456   ;;  %v160_v0 = vld [vmem:[%s139_s29] sm:$0xff]  ;;  %v486_v10 = vmov 0   ;;  %v487_v33 = vmov 1   ;;  %s488_s30 = smov 1   ;;  %v215_v42 = vlaneseq }
  0x35   : > { %v162_v1 = vcombine.high %v160_v0, %v160_v0  ;;  %v165_v2 = vsel %vm164_vm0, %v160_v0, 0.0  ;;  %v177_v3 = vmul.f32 %v160_v0, %v160_v0  ;;  %386 = vset.pattern.permute.xlu1 %v486_v10  ;;  %387 = vset.pattern.permute.xlu0 %v487_v33  ;;  %v200_v34 = vld [vmem:[%s661_s1] sm:$0xf]  ;;  %v489_v40 = vmov 839922192   ;;  %s335_s3 = sshll.u32 %s527_s13, 7 }
  0x36   : > { %v213_v41 = vunpack.c.l.s4 %v489_v40  ;;  %v216_v44 = vshrl.u32 %v215_v42, 7  ;;  %s159_s4 = scalar_lea.vmem [#allocation5], %s327_s26  ;;  %s248_s8 = scalar_lea.hbm %s662_s2, %s335_s3 }
  0x37   : > { %v166_v4 = vsel %vm164_vm0, %v162_v1, 0.0  ;;  %v179_v5 = vcombine.high %v177_v3, %v177_v3  ;;  %v181_v6 = vsel %vm164_vm0, %v177_v3, 0.0  ;;  %s250_s5 = sshll.u32 %s159_s4, 4  ;;  %s236_s14 = scalar_lea.sflag [#allocation4], %s604_s25  ;;  %s251_s5 = int_to_ptr.vmem [resolvable:$true] %s250_s5 }
  0x38   : > { %v167_v7 = vadd.f32 %v166_v4, %v165_v2  ;;  %v214_v43 = vunpack.c.0.s8 %v213_v41  ;;  %s419_s16 = scalar_lea.vmem %s251_s5, 128  ;;  %p673_p12 = scmp.ne.s32.totalorder %s667_s21, 0 }
  0x39   : > { %v182_v8 = vsel %vm164_vm0, %v179_v5, 0.0  ;;  %p420_p11 = scmp.ne.s32.totalorder %s251_s5, %s419_s16  ;;  %s490_s17 = smov [#allocation5]  }
  0x3a   : > { %168 = vadd.xlane.f32.xlu0 %v167_v7  ;;  %v183_v9 = vadd.f32 %v182_v8, %v181_v6  ;;  %v217_v45 = vsub.s32 %v214_v43, %v216_v44  ;;  %s423_s13 = sshll.u32 %s490_s17, 4  ;;  %s424_s13 = int_to_ptr.vmem [resolvable:$false] %s423_s13 }
  0x3b   : > { %p421_p13 = pnand %p420_p11, %p673_p12  ;;  %s425_s19 = scalar_lea.vmem %s424_s13, 256 }
  0x3c   : > { %p426_p3 = scmp.lt.s32.totalorder %s251_s5, %s424_s13  ;;  %p427_p5 = scmp.lt.s32.totalorder %s425_s19, %s419_s16 }
  0x3d   : > { %p422_p1 = pneg %p421_p13 }
  0x3e   : > { %184 = vadd.xlane.f32.xlu0 %v183_v9  ;;  %p428_p8 = por %p427_p5, %p426_p3 }
  0x40   : > { %p429_p10 = pnand %p428_p8, %p422_p1 }
  0xc3   : > { %v169_v11 = vpop.xlane.xlu0 %168 }
  0xc4   : > { %v170_v12 = vsel %vm164_vm0, %v169_v11, 0.0 }
  0xc5   : > { %v171_v13 = vrot.slane %v170_v12, 4 }
  0xc7   : > { %v172_v14 = vadd.f32 %v171_v13, %v170_v12  ;;  %v185_v15 = vpop.xlane.xlu0 %184 }
  0xc8   : > { %v186_v16 = vsel %vm164_vm0, %v185_v15, 0.0 }
  0xc9   : > { %v173_v17 = vrot.slane %v172_v14, 2  ;;  %v187_v18 = vrot.slane %v186_v16, 4 }
  0xcb   : > { %v174_v19 = vadd.f32 %v173_v17, %v172_v14  ;;  %v188_v20 = vadd.f32 %v187_v18, %v186_v16 }
  0xcd   : > { %v175_v21 = vrot.slane %v174_v19, 1  ;;  %v189_v22 = vrot.slane %v188_v20, 2 }
  0xcf   : > { %v190_v23 = vadd.f32 %v189_v22, %v188_v20  ;;  %v176_v24 = vadd.f32 %v175_v21, %v174_v19 }
  0xd1   : > { %v191_v25 = vrot.slane %v190_v23, 1  ;;  %v193_v26 = vmul.f32 0.0009765625, %v176_v24 }
  0xd3   : > { %v192_v27 = vadd.f32 %v191_v25, %v190_v23  ;;  %v195_v29 = vmul.f32 %v193_v26, %v193_v26 }
  0xd5   : > { %v194_v28 = vmul.f32 0.0009765625, %v192_v27 }
  0xd7   : > { %v196_v30 = vsub.f32 %v194_v28, %v195_v29 }
  0xd9   : > { %v197_v31 = vmax.f32 %v196_v30, 0.0 }
  0xdb   : > { %v198_v32 = vadd.f32 1e-05, %v197_v31 }
  0xdd   : > { %389 = vrsqrt.f32 %v198_v32 }
  0xea   : > { %v390_v35 = vpop.eup %389 }
  0xeb   : > { %v201_v36 = vmul.f32 %v390_v35, %v200_v34 }
  0xed   : > { %v202_v37 = vmul.f32 %v201_v36, %v193_v26 }
  0xef   : > { %204 = vrot.lane.b32.xlu1 %v202_v37, %s488_s30 }
  0xf3   : > { %210 = vperm.xlu1 %386, %v201_v36  }
 0x161   : > { %v205_v38 = vpop.permute.xlu1 %204 }
 0x162   : > { %v207_v39 = vsub.f32 %v200_v34, %v205_v38 }
 0x164   : > { %223 = vperm.xlu0 %387, %v207_v39  }
 0x16e   : > { %v211_v46 = vpop.permute.xlu1 %210 }
 0x16f   : > { %v218_v47 = vrot.slane %v211_v46, %v217_v45 }
 0x171   : > { %v220_v49 = vmul.f32 %v218_v47, %v160_v0 }
 0x1df   : > { %v224_v48 = vpop.permute.xlu0 %223 }
 0x1e0   : > { %v231_v50 = vrot.slane %v224_v48, %v217_v45 }
 0x1e2   : > { %v233_v51 = vadd.f32 %v231_v50, %v220_v49 }
 0x1e4   : > { %234 = vst [vmem:[%s159_s4] sm:$0xff] %v233_v51 }
 0x1e5   : > { %432 = shalt.err (!%p429_p10)
}
 0x1e6   : > { %s433_s23 = scalar_lea.hbm %s248_s8, 128  ;;  %s437_s26 = scalar_lea.hbm %s662_s2, 256 }
 0x1e7   : > { %p434_p2 = scmp.ne.s32.totalorder %s248_s8, %s433_s23  ;;  %p438_p7 = scmp.lt.s32.totalorder %s248_s8, %s662_s2 }
 0x1e8   : > { %p439_p0 = scmp.lt.s32.totalorder %s437_s26, %s433_s23 }
 0x1e9   : > { %p435_p4 = pnand %p434_p2, %p673_p12 }
 0x1ea   : > { %p440_p6 = por %p439_p0, %p438_p7 }
 0x1eb   : > { %p436_p9 = pneg %p435_p4 }
 0x1ed   : > { %p441_p11 = pnand %p440_p6, %p436_p9 }
 0x1ef   : > { %444 = shalt.err (!%p441_p11)
}
 0x1f0   : > { %338 = dma.vmem_to_hbm [thread:$0]  (%p673_p12), %s251_s5, 128, %s248_s8, %s236_s14  }
 0x1f1 PF: > { %s262_s20 = sand.u32 1, %s471_s9   ;;  %p674_p13 = scmp.ne.s32.totalorder %s668_s22, 0 }
 0x1f2   : > { %p675_p1 = scmp.ge.s32.totalorder %s483_s12, 2  ;;  %s263_s28 = scalar_lea.sflag [#allocation4], %s262_s20 }
 0x1f4   : > { %p345_p3 = pnand %p675_p1, %p674_p13 }
 0x1f6   : > { %p346_p5 = pneg %p345_p3 }
 0x1f8   : > { %466 = dma.done.wait (%p346_p5), %s263_s28, 128  }
 0x1f9   : > { %468 = vsyncadd (%p346_p5), %s263_s28, 4294967168  ;;  %p15_p8 = scmp.ge.s32.totalorder %s531_s15, 4   ;;  %s676_s9 = smov %s475_s10 }
 0x1fa   : > { %s677_s10 = smov %s479_s11  ;;  %s678_s11 = smov %s543_s18 }
 0x1fb   : > { %s679_s12 = smov %s531_s15  ;;  %17 = sbr.rel (!%p15_p8) target bundleno = 5 (0x5), region = 73 }
 0x200   :  { %268 = vsyncpa [#allocation3], 1 }
 0x201   :  { %270 = vsyncpa [#allocation3 + $0x1], 1 }
 0x202   :  { %271 = vsyncpa [#allocation4], 1 }
 0x203   :  { %273 = vsyncpa [#allocation4 + $0x1], 1 }

</bundles_post_ra>
